<compile_context>
chip_gen: v6e
topology: v6e:2x2x1
jax: 0.10.0
libtpu: 0.0.40
codegen_flags: <defaults>
</compile_context>

<pallas_src>
import functools

import jax
import jax.numpy as jnp
from jax.experimental import pallas as pl
from jax.experimental.pallas import tpu as pltpu

_SMALL_N = 1024                    # < one (8,128) vreg tile -> plain fn(x)
_MAX_TN = 8192                     # lane-dim tile when a single row is huge
_MIN_PAR_BLOCK_ELEMS = 64 * 1024   # don't shrink blocks below this for megacore


def _nonlinearity_kernel(x_ref, o_ref, *, fn):
    # Elementwise hot path on one VMEM tile.
    o_ref[...] = fn(x_ref[...]).astype(o_ref.dtype)


def _vmem_budget():
    """(target bytes per block per array, vmem_limit_bytes) per TPU generation."""
    try:
        cap = getattr(pltpu.get_tpu_info(), "vmem_capacity_bytes", 64 << 20)
    except Exception:  # info unavailable (e.g. interpret mode) -> conservative
        cap = 64 << 20
    if cap >= (96 << 20):            # v5e / v6e: 128 MiB physical VMEM
        return 8 << 20, 48 << 20
    return 4 << 20, 32 << 20         # v7x: 64 MiB physical VMEM


def non_linearity(x, fn=jnp.tanh):
    """Pallas equivalent of NonLinearity(fn)(x) for an elementwise fn."""
    orig_shape = x.shape

    # Output dtype/shape of the wrapped fn (handles int -> float fns).
    out_aval = jax.eval_shape(fn, jax.ShapeDtypeStruct(x.shape, x.dtype))
    if out_aval.shape != x.shape:
        # Not shape-preserving => not elementwise; NonLinearity just calls fn.
        # TODO(synk): no Pallas fast path for non-elementwise wrapped fns.
        return fn(x)
    out_dtype = out_aval.dtype

    n = x.size
    if n < _SMALL_N:
        # Tiny activation: pallas_call fixed cost > a fused XLA elementwise op.
        return fn(x)

    # ---- zero-copy 2-D view (reshape of a contiguous array is free) --------
    last = orig_shape[-1] if x.ndim >= 1 else 1
    if x.ndim >= 2 and last % 128 == 0:
        rows, cols = n // last, last                       # lane-aligned tail dim
    else:
        cols = next((c for c in (1024, 512, 256, 128) if n % c == 0), 0)
        if cols:
            rows = n // cols                               # lane-dense flat repack
        else:
            rows, cols = n // last, last                   # ragged lane dim (full-dim block)
    x2d = x.reshape(rows, cols)

    # ---- tile selection -----------------------------------------------------
    in_bytes = jnp.dtype(x.dtype).itemsize
    out_bytes = jnp.dtype(out_dtype).itemsize
    block_bytes, vmem_limit = _vmem_budget()
    target_elems = max(8 * 128, block_bytes // max(in_bytes, out_bytes))
    # Sublane multiple covering packed dtypes (f32: 8, bf16: 16, int8/fp8: 32).
    smul = max(8, 32 // min(in_bytes, out_bytes))

    tn = cols if cols <= _MAX_TN else _MAX_TN              # full dim or 128-multiple
    ncol_blocks = pl.cdiv(cols, tn)
    tm = max(smul, (target_elems // tn) // smul * smul)

    # Keep >= ~8 blocks (while blocks stay big) so v7x can use both TensorCores.
    if ncol_blocks < 8:
        want_rb = pl.cdiv(8, ncol_blocks)
        tm_par = max(smul, pl.cdiv(pl.cdiv(rows, want_rb), smul) * smul)
        if tm_par * tn >= _MIN_PAR_BLOCK_ELEMS:
            tm = min(tm, tm_par)
    if tm >= rows:
        tm = rows                                          # full-dim block is always legal
    grid = (pl.cdiv(rows, tm), ncol_blocks)                # ragged last blocks OK

    kernel = functools.partial(_nonlinearity_kernel, fn=fn)
    out2d = pl.pallas_call(
        kernel,
        out_shape=jax.ShapeDtypeStruct((rows, cols), out_dtype),
        grid=grid,
        in_specs=[pl.BlockSpec((tm, tn), lambda i, j: (i, j))],
        out_specs=pl.BlockSpec((tm, tn), lambda i, j: (i, j)),
        compiler_params=pltpu.CompilerParams(
            dimension_semantics=("parallel", "parallel"),
            vmem_limit_bytes=vmem_limit,
        ),
    )(x2d)

    return out2d.reshape(orig_shape)


if __name__ == "__main__":
    key = jax.random.PRNGKey(0)
    k0, k1, k2, k3 = jax.random.split(key, 4)

    # Small NCHW activation: batch=2, channels=4, spatial=16x16.
    x = jax.random.normal(k0, (2, 4, 16, 16), dtype=jnp.float32)
    y = jax.block_until_ready(non_linearity(x, fn=jnp.tanh))
    y_ref = jnp.tanh(x)
    assert y.shape == x.shape and y.dtype == y_ref.dtype
    assert jnp.allclose(y, y_ref, atol=1e-6, rtol=1e-6)

    # Lane-aligned trailing dim with a ragged row grid (4100 rows of 128 lanes)
    # -> exercises multi-block pipelining and masked partial last block.
    x2 = jax.random.normal(k1, (4, 25, 41, 128), dtype=jnp.float32)
    y2 = jax.block_until_ready(non_linearity(x2, fn=jnp.tanh))
    assert jnp.allclose(y2, jnp.tanh(x2), atol=1e-6, rtol=1e-6)

    # Fully unaligned shape: zero-copy (495, 17) view, no pad / slice passes.
    x3 = jax.random.normal(k2, (3, 5, 33, 17), dtype=jnp.float32)
    y3 = jax.block_until_ready(non_linearity(x3, fn=jnp.tanh))
    assert jnp.allclose(y3, jnp.tanh(x3), atol=1e-6, rtol=1e-6)

    # Different wrapped non-linearity and bf16 dtype path.
    x4 = jax.random.normal(k3, (8, 4, 32), dtype=jnp.bfloat16)
    y4 = jax.block_until_ready(non_linearity(x4, fn=jax.nn.gelu))
    assert y4.dtype == x4.dtype
    assert jnp.allclose(y4.astype(jnp.float32),
                        jax.nn.gelu(x4).astype(jnp.float32),
                        atol=2e-2, rtol=2e-2)

    print("KERNEL_OK")
</pallas_src>

<mosaic_0001>
module attributes {stable_mosaic.version = 11 : i64} {
  func.func @_nonlinearity_kernel(%arg0: i32, %arg1: i32, %arg2: memref<2x1024xf32, #tpu.memory_space<vmem>>, %arg3: memref<2x1024xf32, #tpu.memory_space<vmem>>) attributes {dimension_semantics = [#tpu.dimension_semantics<parallel>, #tpu.dimension_semantics<parallel>], iteration_bounds = array<i64: 1, 1>, scalar_prefetch = 0 : i64, scratch_operands = 0 : i64, tpu.core_type = #tpu.core_type<tc>, window_params = [{transform_indices = @transform_0, window_bounds = array<i64: 2, 1024>}, {transform_indices = @transform_1, window_bounds = array<i64: 2, 1024>}]} {
    %c0 = arith.constant 0 : index
    %c0_0 = arith.constant 0 : index
    %0 = vector.load %arg2[%c0, %c0_0] : memref<2x1024xf32, #tpu.memory_space<vmem>>, vector<2x1024xf32>
    %1 = math.tanh %0 : vector<2x1024xf32>
    %c0_1 = arith.constant 0 : index
    %c0_2 = arith.constant 0 : index
    %2 = vector.load %arg3[%c0_1, %c0_2] : memref<2x1024xf32, #tpu.memory_space<vmem>>, vector<2x1024xf32>
    tpu.vector_store %arg3[%c0_1, %c0_2], %1 {strides = array<i32>} : memref<2x1024xf32, #tpu.memory_space<vmem>>, vector<2x1024xf32>,
    return
  }
  func.func @transform_0(%arg0: i32, %arg1: i32) -> (i32, i32) {
    %c0_i32 = arith.constant 0 : i32
    return %arg0, %arg1 : i32, i32
  }
  func.func @transform_1(%arg0: i32, %arg1: i32) -> (i32, i32) {
    %c0_i32 = arith.constant 0 : i32
    return %arg0, %arg1 : i32, i32
  }
}

</mosaic_0001>

<bundles_post_ra>
// kernel: tpu_custom_call.1
= control target key start
LH: loop header
LB: loop body
LE: loop exit
PB: predicated region body
PF: predicated region fallthrough
CT: control target
= control target key end

     0   :  { %6 = vsyncpa [#allocation3], 0  ;;  %s110_s0 = inlined_call_operand.hbm [shape: f32[2,1024], index: 0, kind: input, shape index: {}]   ;;  %s111_s1 = inlined_call_operand.hbm [shape: f32[2,1024], index: 1, kind: output, shape index: {}]  }
   0x1   :  { %7 = vsyncpa [#allocation4], 0  ;;  %s92_s6 = smov [#allocation2]  }
   0x2   :  { %s14_s7 = sshll.u32 %s92_s6, 4  ;;  %s15_s7 = int_to_ptr.vmem [resolvable:$true] %s14_s7 }
   0x3   :  { %s56_s8 = scalar_lea.vmem %s15_s7, 256  ;;  %p61_p1 = scmp.lt.s32.totalorder %s15_s7, %s15_s7 }
   0x4   :  { %p57_p0 = scmp.ne.s32.totalorder %s15_s7, %s56_s8  ;;  %p62_p2 = scmp.lt.s32.totalorder %s56_s8, %s56_s8 }
   0x6   :  { %p63_p3 = por %p62_p2, %p61_p1 }
   0x8   :  { %p64_p4 = pnand %p63_p3, %p57_p0 }
   0xa   :  { %67 = shalt.err (!%p64_p4)
}
   0xb   :  { %17 = dma.hbm_to_vmem [thread:$0]  %s110_s0, 256, %s15_s7, [#allocation3]  }
   0xc   :  { %88 = dma.done.wait [#allocation3], 256  }
   0xd   :  { %89 = vsyncadd [#allocation3], 4294967040  ;;  %v21_v0 = vld [vmem:[#allocation2] sm:$0xff]  ;;  %v22_v1 = vld [vmem:[#allocation2 + $0x8] sm:$0xff]  ;;  %s93_s11 = smov [#allocation5]  }
   0xe   :  { %44 = vtanh.f32 %v21_v0  ;;  %s33_s12 = sshll.u32 %s93_s11, 4  ;;  %s34_s12 = int_to_ptr.vmem [resolvable:$true] %s33_s12 }
   0xf   :  { %46 = vtanh.f32 %v22_v1  ;;  %s68_s13 = scalar_lea.vmem %s34_s12, 256  ;;  %p73_p6 = scmp.lt.s32.totalorder %s34_s12, %s34_s12 }
  0x10   :  { %p69_p5 = scmp.ne.s32.totalorder %s34_s12, %s68_s13  ;;  %p74_p7 = scmp.lt.s32.totalorder %s68_s13, %s68_s13 }
  0x12   :  { %p75_p8 = por %p74_p7, %p73_p6 }
  0x14   :  { %p76_p9 = pnand %p75_p8, %p69_p5 }
  0x1b   :  { %v45_v2 = vpop.eup %44 }
  0x1c   :  { %v47_v3 = vpop.eup %46  ;;  %25 = vst [vmem:[#allocation5] sm:$0xff] %v45_v2 }
  0x1d   :  { %26 = vst [vmem:[#allocation5 + $0x8] sm:$0xff] %v47_v3 }
  0x1e   :  { %79 = shalt.err (!%p76_p9)
}
  0x1f   :  { %36 = dma.vmem_to_hbm [thread:$0]  %s34_s12, 256, %s111_s1, [#allocation4]  }
  0x20   :  { %90 = dma.done.wait [#allocation4], 256  }
  0x21   :  { %91 = vsyncadd [#allocation4], 4294967040 }
  0x22   :  { %40 = vsyncpa [#allocation3], 1 }
  0x23   :  { %41 = vsyncpa [#allocation4], 1 }

</bundles_post_ra>
